<compile_context>
chip_gen: v5e
topology: v5e:2x2
jax: 0.10.0
libtpu: 0.0.40
codegen_flags: <defaults>
</compile_context>

<pallas_src>
import functools

import jax
import jax.numpy as jnp
from jax.experimental import pallas as pl
from jax.experimental.pallas import tpu as pltpu


def _ce_kernel(logits_ref, tgt_ref, loss_ref, m_sc, l_sc, tx_sc, *,
               ignore_index, num_classes, tc, mask_classes):
    """Process one (tm, tc) logits tile; online log-sum-exp across the class-tile axis."""
    c = pl.program_id(1)
    nc = pl.num_programs(1)

    @pl.when(c == 0)
    def _init():
        m_sc[...] = jnp.full_like(m_sc, -jnp.inf)   # running row max
        l_sc[...] = jnp.zeros_like(l_sc)            # running sum of exp(x - m)
        tx_sc[...] = jnp.zeros_like(tx_sc)          # logit at the target class

    x = logits_ref[...]                             # (tm, tc), native dtype (no upcast yet)
    t = tgt_ref[...]                                # (tm, 1) int32

    # Local (per-tile) class index of each lane.  The class-tile offset is folded into the
    # per-row / scalar operands instead of a full-tile add.
    col = jax.lax.broadcasted_iota(jnp.int32, x.shape, dimension=1)
    t_local = t - c * tc                            # (tm, 1) — cheap column op

    if mask_classes:
        # Only the last class tile is ragged; every other tile stays mask-free.
        def _mask_last(xv):
            limit = num_classes - c * tc            # scalar: #valid lanes in this tile (>= 1)
            return jnp.where(col < limit, xv, jnp.array(-jnp.inf, dtype=xv.dtype))

        x_stats = jax.lax.cond(c == nc - 1, _mask_last, lambda xv: xv, x)
    else:
        x_stats = x

    # Online log-sum-exp.  Max runs in the native dtype (bf16->f32 is exact, max is
    # order-preserving); the f32 upcast happens only inside the exp argument.
    m_old = m_sc[...]
    tile_max = jnp.max(x_stats, axis=-1, keepdims=True).astype(jnp.float32)
    m_new = jnp.maximum(m_old, tile_max)
    p_sum = jnp.sum(jnp.exp(x_stats.astype(jnp.float32) - m_new), axis=-1, keepdims=True)
    l_sc[...] = l_sc[...] * jnp.exp(m_old - m_new) + p_sum
    m_sc[...] = m_new

    # Target-logit gather via compare+select (VPU) + lane reduce (XLU).  Exactly one class tile
    # contributes per valid row; ignored rows (t == ignore_index) and OOB lanes never match.
    tx_sc[...] = tx_sc[...] + jnp.sum(
        jnp.where(col == t_local, x, jnp.array(0, dtype=x.dtype)),
        axis=-1, keepdims=True).astype(jnp.float32)

    @pl.when(c == nc - 1)
    def _finalize():
        lse = m_sc[...] + jnp.log(l_sc[...])        # full log-sum-exp of each row
        loss = lse - tx_sc[...]                     # -log_softmax at the target class
        loss_ref[...] = jnp.where(t == ignore_index, 0.0, loss)


def _tpu_vmem_capacity_bytes(default=64 * 1024 * 1024):
    """Best-effort VMEM capacity query; falls back to a v7x-safe 64 MiB."""
    try:
        info = pltpu.get_tpu_info()
        cap = getattr(info, "vmem_capacity_bytes", None)
        if cap:
            return int(cap)
    except Exception:
        pass
    return default


def _choose_tiles(M, C, itemsize, *, vmem_budget_bytes, tm_cap, tc_cap, single_tile_c):
    """Pick (tm, tc, nc) so double-buffered tiles stay inside the VMEM budget."""
    if C <= single_tile_c:
        tc, nc = C, 1                 # block last dim == full array dim -> no 128 constraint
    else:
        # Near-even class tiles (multiples of 128): the ragged last tile wastes < 128 lanes.
        nc0 = -(-C // tc_cap)
        tc = (-(-(-(-C // nc0)) // 128)) * 128     # round_up(ceil(C / nc0), 128) <= tc_cap
        nc = -(-C // tc)
    mask_classes = (nc * tc != C)

    # Per-row VMEM bytes: double-buffered logits tile + targets + output + 3 f32 scratch cols.
    per_row = 2 * tc * itemsize + 2 * 4 + 2 * 4 + 3 * 4
    tm = vmem_budget_bytes // per_row
    tm = max(8, min(tm_cap, (tm // 8) * 8))
    m_rounded = -(-M // 8) * 8
    tm = min(tm, m_rounded)

    # Megacore: the 'parallel' row axis is the only dimension the two v7x TensorCores can
    # shard, so make sure it has at least two blocks whenever there are enough rows.
    if m_rounded >= 16 and -(-M // tm) < 2:
        tm = max(8, (-(-(m_rounded // 2) // 8)) * 8)

    return tm, tc, nc, mask_classes


def master_cell_loss(outputs, padded_targets, *, ignore_index=-1):
    """outputs: (N, T, C) float logits; padded_targets: (N, T+1) int.

    Returns per-element CE loss of shape (N*T,) float32 (reduction='none',
    flatten=True), matching MASTERCELLLoss.forward.
    """
    N, T, C = outputs.shape
    M = N * T

    logits = outputs.reshape(M, C)                               # flatten (no data movement)
    tgt = padded_targets[:, 1:].astype(jnp.int32).reshape(M, 1)  # drop leading (SOS) token

    itemsize = jnp.dtype(outputs.dtype).itemsize

    # Generation-aware budgets: 128 MiB VMEM parts (v5e/v6e) can afford much bigger class
    # tiles / single-tile vocab; v7x (64 MiB) and unknown chips stay conservative.
    vmem_cap = _tpu_vmem_capacity_bytes()
    if vmem_cap >= 128 * 1024 * 1024:
        budget, tc_cap, single_tile_c = 80 * 1024 * 1024, 4096, 8192
        vmem_limit = 100 * 1024 * 1024
    else:
        budget, tc_cap, single_tile_c = 36 * 1024 * 1024, 2048, 4096
        vmem_limit = 48 * 1024 * 1024

    tm, tc, nc, mask_classes = _choose_tiles(
        M, C, itemsize, vmem_budget_bytes=budget, tm_cap=1024,
        tc_cap=tc_cap, single_tile_c=single_tile_c)

    nb = -(-M // tm)
    Mp = nb * tm
    if Mp != M:
        # Pad only the cheap int32 target column; padded rows carry ignore_index, so the
        # garbage rows Pallas reads past the end of `logits` are masked to 0 and sliced off.
        tgt = jnp.pad(tgt, ((0, Mp - M), (0, 0)), constant_values=ignore_index)

    kernel = functools.partial(_ce_kernel, ignore_index=ignore_index,
                               num_classes=C, tc=tc, mask_classes=mask_classes)

    loss = pl.pallas_call(
        kernel,
        out_shape=jax.ShapeDtypeStruct((Mp, 1), jnp.float32),
        grid_spec=pltpu.PrefetchScalarGridSpec(
            num_scalar_prefetch=0,
            grid=(nb, nc),                                       # reduction (class) axis last
            in_specs=[
                pl.BlockSpec((tm, tc), lambda i, c: (i, c)),     # logits tile (native dtype)
                pl.BlockSpec((tm, 1), lambda i, c: (i, 0)),      # targets column
            ],
            out_specs=pl.BlockSpec((tm, 1), lambda i, c: (i, 0)),
            scratch_shapes=[pltpu.VMEM((tm, 1), jnp.float32),    # running max
                            pltpu.VMEM((tm, 1), jnp.float32),    # running sum-exp
                            pltpu.VMEM((tm, 1), jnp.float32)],   # target logit
        ),
        compiler_params=pltpu.CompilerParams(
            dimension_semantics=("parallel", "arbitrary"),
            vmem_limit_bytes=vmem_limit,
        ),
    )(logits, tgt)

    return loss[:M, 0]


def _reference_loss(outputs, padded_targets, ignore_index=-1):
    N, T, C = outputs.shape
    targets = padded_targets[:, 1:].reshape(-1).astype(jnp.int32)
    logits = outputs.reshape(-1, C).astype(jnp.float32)
    logp = jax.nn.log_softmax(logits, axis=-1)
    safe_t = jnp.where(targets == ignore_index, 0, targets)
    nll = -jnp.take_along_axis(logp, safe_t[:, None], axis=-1)[:, 0]
    return jnp.where(targets == ignore_index, 0.0, nll)


if __name__ == "__main__":
    key = jax.random.PRNGKey(0)
    k1, k2 = jax.random.split(key)

    N, T, C = 2, 8, 32  # batch, seq (decoder outputs), num classes
    outputs = jax.random.normal(k1, (N, T, C), dtype=jnp.float32)

    # padded_targets has one extra leading token (e.g. SOS); include some ignore_index (-1)
    padded_targets = jax.random.randint(k2, (N, T + 1), 0, C, dtype=jnp.int32)
    padded_targets = padded_targets.at[0, -2:].set(-1)   # some padding positions
    padded_targets = padded_targets.at[1, -1:].set(-1)

    loss = master_cell_loss(outputs, padded_targets, ignore_index=-1)
    loss = jax.block_until_ready(loss)

    ref = _reference_loss(outputs, padded_targets, ignore_index=-1)
    assert loss.shape == (N * T,)
    assert jnp.allclose(loss, ref, atol=1e-5, rtol=1e-5)

    print("KERNEL_OK")
</pallas_src>

<mosaic_0001>
module attributes {stable_mosaic.version = 11 : i64} {
  func.func @_ce_kernel(%arg0: i32, %arg1: i32, %arg2: memref<8x32xf32, #tpu.memory_space<vmem>>, %arg3: memref<8x1xi32, #tpu.memory_space<vmem>>, %arg4: memref<8x1xf32, #tpu.memory_space<vmem>>, %arg5: memref<8x1xf32, #tpu.memory_space<vmem>>, %arg6: memref<8x1xf32, #tpu.memory_space<vmem>>, %arg7: memref<8x1xf32, #tpu.memory_space<vmem>>) attributes {dimension_semantics = [#tpu.dimension_semantics<parallel>, #tpu.dimension_semantics<arbitrary>], iteration_bounds = array<i64: 2, 1>, scalar_prefetch = 0 : i64, scratch_operands = 3 : i64, tpu.core_type = #tpu.core_type<tc>, window_params = [{transform_indices = @transform_0, window_bounds = array<i64: 8, 32>}, {transform_indices = @transform_1, window_bounds = array<i64: 8, 1>}, {transform_indices = @transform_2, window_bounds = array<i64: 8, 1>}]} {
    %c0_i32 = arith.constant 0 : i32
    %0 = arith.cmpi eq, %arg1, %c0_i32 : i32
    %1 = arith.extui %0 : i1 to i32
    %c0_i32_0 = arith.constant 0 : i32
    %2 = arith.cmpi ne, %1, %c0_i32_0 : i32
    scf.if %2 {
      %cst_21 = arith.constant 0xFF800000 : f32
      %37 = vector.broadcast %cst_21 : f32 to vector<8x1xf32>
      %c0_22 = arith.constant 0 : index
      %c0_23 = arith.constant 0 : index
      %38 = vector.load %arg5[%c0_22, %c0_23] : memref<8x1xf32, #tpu.memory_space<vmem>>, vector<8x1xf32>
      tpu.vector_store %arg5[%c0_22, %c0_23], %37 {strides = array<i32>} : memref<8x1xf32, #tpu.memory_space<vmem>>, vector<8x1xf32>,
      %cst_24 = arith.constant 0.000000e+00 : f32
      %39 = vector.broadcast %cst_24 : f32 to vector<8x1xf32>
      %c0_25 = arith.constant 0 : index
      %c0_26 = arith.constant 0 : index
      %40 = vector.load %arg6[%c0_25, %c0_26] : memref<8x1xf32, #tpu.memory_space<vmem>>, vector<8x1xf32>
      tpu.vector_store %arg6[%c0_25, %c0_26], %39 {strides = array<i32>} : memref<8x1xf32, #tpu.memory_space<vmem>>, vector<8x1xf32>,
      %cst_27 = arith.constant 0.000000e+00 : f32
      %41 = vector.broadcast %cst_27 : f32 to vector<8x1xf32>
      %c0_28 = arith.constant 0 : index
      %c0_29 = arith.constant 0 : index
      %42 = vector.load %arg7[%c0_28, %c0_29] : memref<8x1xf32, #tpu.memory_space<vmem>>, vector<8x1xf32>
      tpu.vector_store %arg7[%c0_28, %c0_29], %41 {strides = array<i32>} : memref<8x1xf32, #tpu.memory_space<vmem>>, vector<8x1xf32>,
    } else {
    }
    %c0 = arith.constant 0 : index
    %c0_1 = arith.constant 0 : index
    %3 = vector.load %arg2[%c0, %c0_1] : memref<8x32xf32, #tpu.memory_space<vmem>>, vector<8x32xf32>
    %c0_2 = arith.constant 0 : index
    %c0_3 = arith.constant 0 : index
    %4 = vector.load %arg3[%c0_2, %c0_3] : memref<8x1xi32, #tpu.memory_space<vmem>>, vector<8x1xi32>
    %5 = tpu.iota {dimensions = array<i32: 1>} : vector<8x32xi32>
    %c32_i32 = arith.constant 32 : i32
    %6 = arith.muli %arg1, %c32_i32 : i32
    %7 = vector.broadcast %6 : i32 to vector<8x1xi32>
    %8 = arith.subi %4, %7 : vector<8x1xi32>
    %c0_4 = arith.constant 0 : index
    %c0_5 = arith.constant 0 : index
    %9 = vector.load %arg5[%c0_4, %c0_5] : memref<8x1xf32, #tpu.memory_space<vmem>>, vector<8x1xf32>
    %cst = arith.constant dense<0xFF800000> : vector<8xf32>
    %10 = vector.multi_reduction <maximumf>, %3, %cst [1] : vector<8x32xf32> to vector<8xf32>
    %11 = vector.shape_cast %10 : vector<8xf32> to vector<8x1xf32>
    %12 = arith.maximumf %9, %11 : vector<8x1xf32>
    %13 = vector.broadcast %12 : vector<8x1xf32> to vector<8x32xf32>
    %14 = arith.subf %3, %13 : vector<8x32xf32>
    %15 = math.exp %14 : vector<8x32xf32>
    %cst_6 = arith.constant dense<0.000000e+00> : vector<8xf32>
    %16 = vector.multi_reduction <add>, %15, %cst_6 [1] : vector<8x32xf32> to vector<8xf32>
    %17 = vector.shape_cast %16 : vector<8xf32> to vector<8x1xf32>
    %c0_7 = arith.constant 0 : index
    %c0_8 = arith.constant 0 : index
    %18 = vector.load %arg6[%c0_7, %c0_8] : memref<8x1xf32, #tpu.memory_space<vmem>>, vector<8x1xf32>
    %19 = arith.subf %9, %12 : vector<8x1xf32>
    %20 = math.exp %19 : vector<8x1xf32>
    %21 = arith.mulf %18, %20 : vector<8x1xf32>
    %22 = arith.addf %21, %17 : vector<8x1xf32>
    %c0_9 = arith.constant 0 : index
    %c0_10 = arith.constant 0 : index
    %23 = vector.load %arg6[%c0_9, %c0_10] : memref<8x1xf32, #tpu.memory_space<vmem>>, vector<8x1xf32>
    tpu.vector_store %arg6[%c0_9, %c0_10], %22 {strides = array<i32>} : memref<8x1xf32, #tpu.memory_space<vmem>>, vector<8x1xf32>,
    %c0_11 = arith.constant 0 : index
    %c0_12 = arith.constant 0 : index
    %24 = vector.load %arg5[%c0_11, %c0_12] : memref<8x1xf32, #tpu.memory_space<vmem>>, vector<8x1xf32>
    tpu.vector_store %arg5[%c0_11, %c0_12], %12 {strides = array<i32>} : memref<8x1xf32, #tpu.memory_space<vmem>>, vector<8x1xf32>,
    %c0_13 = arith.constant 0 : index
    %c0_14 = arith.constant 0 : index
    %25 = vector.load %arg7[%c0_13, %c0_14] : memref<8x1xf32, #tpu.memory_space<vmem>>, vector<8x1xf32>
    %26 = vector.broadcast %8 : vector<8x1xi32> to vector<8x32xi32>
    %27 = arith.cmpi eq, %5, %26 : vector<8x32xi32>
    %cst_15 = arith.constant 0.000000e+00 : f32
    %28 = vector.broadcast %cst_15 : f32 to vector<8x32xf32>
    %29 = arith.select %27, %3, %28 : vector<8x32xi1>, vector<8x32xf32>
    %cst_16 = arith.constant dense<0.000000e+00> : vector<8xf32>
    %30 = vector.multi_reduction <add>, %29, %cst_16 [1] : vector<8x32xf32> to vector<8xf32>
    %31 = vector.shape_cast %30 : vector<8xf32> to vector<8x1xf32>
    %32 = arith.addf %25, %31 : vector<8x1xf32>
    %c0_17 = arith.constant 0 : index
    %c0_18 = arith.constant 0 : index
    %33 = vector.load %arg7[%c0_17, %c0_18] : memref<8x1xf32, #tpu.memory_space<vmem>>, vector<8x1xf32>
    tpu.vector_store %arg7[%c0_17, %c0_18], %32 {strides = array<i32>} : memref<8x1xf32, #tpu.memory_space<vmem>>, vector<8x1xf32>,
    %c0_i32_19 = arith.constant 0 : i32
    %34 = arith.cmpi eq, %arg1, %c0_i32_19 : i32
    %35 = arith.extui %34 : i1 to i32
    %c0_i32_20 = arith.constant 0 : i32
    %36 = arith.cmpi ne, %35, %c0_i32_20 : i32
    scf.if %36 {
      %c0_21 = arith.constant 0 : index
      %c0_22 = arith.constant 0 : index
      %37 = vector.load %arg5[%c0_21, %c0_22] : memref<8x1xf32, #tpu.memory_space<vmem>>, vector<8x1xf32>
      %c0_23 = arith.constant 0 : index
      %c0_24 = arith.constant 0 : index
      %38 = vector.load %arg6[%c0_23, %c0_24] : memref<8x1xf32, #tpu.memory_space<vmem>>, vector<8x1xf32>
      %39 = math.log %38 : vector<8x1xf32>
      %40 = arith.addf %37, %39 : vector<8x1xf32>
      %c0_25 = arith.constant 0 : index
      %c0_26 = arith.constant 0 : index
      %41 = vector.load %arg7[%c0_25, %c0_26] : memref<8x1xf32, #tpu.memory_space<vmem>>, vector<8x1xf32>
      %42 = arith.subf %40, %41 : vector<8x1xf32>
      %c-1_i32 = arith.constant -1 : i32
      %43 = vector.broadcast %c-1_i32 : i32 to vector<8x1xi32>
      %44 = arith.cmpi eq, %4, %43 : vector<8x1xi32>
      %cst_27 = arith.constant 0.000000e+00 : f32
      %45 = vector.broadcast %cst_27 : f32 to vector<8x1xf32>
      %46 = arith.select %44, %45, %42 : vector<8x1xi1>, vector<8x1xf32>
      %c0_28 = arith.constant 0 : index
      %c0_29 = arith.constant 0 : index
      %47 = vector.load %arg4[%c0_28, %c0_29] : memref<8x1xf32, #tpu.memory_space<vmem>>, vector<8x1xf32>
      tpu.vector_store %arg4[%c0_28, %c0_29], %46 {strides = array<i32>} : memref<8x1xf32, #tpu.memory_space<vmem>>, vector<8x1xf32>,
    } else {
    }
    return
  }
  func.func @transform_0(%arg0: i32, %arg1: i32) -> (i32, i32) {
    %c0_i32 = arith.constant 0 : i32
    return %arg0, %arg1 : i32, i32
  }
  func.func @transform_1(%arg0: i32, %arg1: i32) -> (i32, i32) {
    %c0_i32 = arith.constant 0 : i32
    %c0_i32_0 = arith.constant 0 : i32
    return %arg0, %c0_i32 : i32, i32
  }
  func.func @transform_2(%arg0: i32, %arg1: i32) -> (i32, i32) {
    %c0_i32 = arith.constant 0 : i32
    %c0_i32_0 = arith.constant 0 : i32
    return %arg0, %c0_i32 : i32, i32
  }
}

</mosaic_0001>

<bundles_post_ra>
// kernel: tpu_custom_call.1
= control target key start
LH: loop header
LB: loop body
LE: loop exit
PB: predicated region body
PF: predicated region fallthrough
CT: control target
= control target key end

     0   :  { %s407_s9 = smov 0   ;;  %s409_s10 = smov 0   ;;  %s458_s0 = inlined_call_operand.vmem [shape: f32[16,32], index: 0, kind: input, shape index: {}]   ;;  %s459_s1 = inlined_call_operand.vmem [shape: s32[16,1], index: 1, kind: input, shape index: {}]   ;;  %s460_s2 = inlined_call_operand.vmem [shape: f32[16,1], index: 2, kind: output, shape index: {}]  }
   0x1   :  { %s411_s11 = smov 0  }
   0x2 LB: > { %s24_s12 = sadd.s32 1, %s383_s10  ;;  %p324_p0 = scmp.ge.s32.totalorder %s387_s11, 1  ;;  %s387_s11 = sphi %s411_s11, %s12_s11   ;;  %s383_s10 = sphi %s409_s10, %s462_s10   ;;  %s379_s9 = sphi %s407_s9, %s461_s9  }
   0x3   : > { %p26_p1 = scmp.ge.s32.totalorder %s24_s12, 2  ;;  %p137_p2 = scmp.lt.s32.totalorder %s387_s11, 3 }
   0x5   : > { %s464_s12 = smov (%p26_p1, %s24_s12), 0  ;;  %p138_p3 = pnand %p324_p0, %p137_p2 }
   0x6   : > { %p164_p4 = scmp.lt.s32.totalorder (!%p138_p3), %s379_s9, 1 }
   0x7   : > { %141 = sbr.rel (%p138_p3) target bundleno = 403 (0x193), region = 28 }
   0xc   : > { %vm183_vm0 = vcmask 7168   ;;  %v389_v0 = vmov -inf   ;;  %s466_s9 = smov (!%p164_p4, %s379_s9), 1  ;;  %vm195_vm1 = vcmask 261120   ;;  %v390_v3 = vmov 0  }
   0xd   : > { %184 = vst.msk [vmem:[#allocation2] sm:$0xff] %vm183_vm0, %v389_v0  ;;  %s426_s13 = sshll.u32 %s466_s9, 3  ;;  %357 = vset.pattern.permute.xlu0 %v390_v3  ;;  %358 = vset.pattern.permute.xlu1 %v390_v3  ;;  %v391_v4 = vmov 0.0   ;;  %v189_v10 = vlaneseq }
   0xe   : > { %s170_s16 = scalar_lea.vmem %s458_s0, %s426_s13  ;;  %185 = vst.msk [vmem:[#allocation3] sm:$0xff] %vm183_vm0, %v391_v4  ;;  %s174_s19 = scalar_lea.vmem %s459_s1, %s426_s13 }
   0xf   : > { %v187_v1 = vld [vmem:[%s170_s16] sm:$0xff]  ;;  %186 = vst.msk [vmem:[#allocation4] sm:$0xff] %vm183_vm0, %v391_v4  ;;  %v190_v12 = vand.u32 127, %v189_v10  ;;  %s178_s22 = scalar_lea.vmem %s460_s2, %s426_s13 }
  0x10   : > { %v196_v2 = vsel %vm195_vm1, %v187_v1, -inf  ;;  %v188_v5 = vld [vmem:[%s174_s19] sm:$0xff] }
  0x11   : > { %197 = vmax.xlane.f32.xlu0 %v196_v2  ;;  %222 = vperm.xlu1 %358, %v188_v5   ;;  %vm241_vm3 = vcmp.eq.s32.totalorder %v188_v5, 4294967295 }
  0x14   : > { %v194_v6 = vld [vmem:[#allocation2] sm:$0xff] }
  0x15   : > { %v211_v25 = vld [vmem:[#allocation3] sm:$0xff] }
  0x16   : > { %v220_v20 = vld [vmem:[#allocation4] sm:$0xff] }
  0x83   : > { %v223_v11 = vpop.permute.xlu1 %222 }
  0x84   : > { %v198_v7 = vpop.xlane.xlu0 %197  ;;  %vm224_vm2 = vcmp.eq.s32.totalorder %v190_v12, %v223_v11 }
  0x85   : > { %v199_v8 = vmax.f32 %v194_v6, %v198_v7  ;;  %v225_v13 = vsel %vm224_vm2, %v187_v1, 0.0 }
  0x86   : > { %v226_v14 = vsel %vm195_vm1, %v225_v13, 0.0 }
  0x87   : > { %v212_v9 = vsub.f32 %v194_v6, %v199_v8  ;;  %219 = vst.msk [vmem:[#allocation2] sm:$0xff] %vm183_vm0, %v199_v8  ;;  %202 = vperm.xlu0 %357, %v199_v8   ;;  %227 = vadd.xlane.f32.xlu2 %v226_v14 }
  0x89   : > { %v213_v23 = vmul.f32 1.442695, %v212_v9 }
  0x8e   : > { %v234_v32 = vld [vmem:[#allocation2] sm:$0xff] }
  0xf9   : > { %v203_v15 = vpop.permute.xlu0 %202 }
  0xfa   : > { %v205_v16 = vsub.f32 %v187_v1, %v203_v15  ;;  %v228_v21 = vpop.xlane.xlu2 %227 }
  0xfb   : > { %v229_v22 = vadd.f32 %v228_v21, %v220_v20 }
  0xfc   : > { %v206_v17 = vmul.f32 1.442695, %v205_v16 }
  0xfd   : > { %230 = vst.msk [vmem:[#allocation4] sm:$0xff] %vm183_vm0, %v229_v22 }
  0xfe   : > { %359 = vpow2.f32 %v206_v17 }
  0xff   : > { %361 = vpow2.f32 %v213_v23 }
 0x104   : > { %v360_v18 = vpop.eup %359  ;;  %v239_v33 = vld [vmem:[#allocation4] sm:$0xff] }
 0x105   : > { %v208_v19 = vsel %vm195_vm1, %v360_v18, 0.0  ;;  %v362_v24 = vpop.eup %361 }
 0x106   : > { %209 = vadd.xlane.f32.xlu1 %v208_v19  ;;  %v215_v26 = vmul.f32 %v362_v24, %v211_v25 }
 0x179   : > { %v210_v27 = vpop.xlane.xlu1 %209 }
 0x17a   : > { %v216_v28 = vadd.f32 %v215_v26, %v210_v27 }
 0x17c   : > { %218 = vst.msk [vmem:[#allocation3] sm:$0xff] %vm183_vm0, %v216_v28 }
 0x183   : > { %v235_v29 = vld [vmem:[#allocation3] sm:$0xff] }
 0x184   : > { %363 = vlog2.f32 %v235_v29 }
 0x18a   : > { %v364_v30 = vpop.eup %363 }
 0x18b   : > { %v237_v31 = vmul.f32 0.6931472, %v364_v30 }
 0x18d   : > { %v238_v34 = vadd.f32 %v237_v31, %v234_v32 }
 0x18f   : > { %v240_v35 = vsub.f32 %v238_v34, %v239_v33 }
 0x191   : > { %v242_v36 = vsel %vm241_vm3, 0.0, %v240_v35 }
 0x192   : > { %243 = vst.msk [vmem:[%s178_s22] sm:$0xff] %vm183_vm0, %v242_v36 }
 0x193 PF: > { %s12_s11 = sadd.s32 1, %s387_s11   ;;  %s461_s9 = smov %s383_s10 }
 0x194   : > { %p9_p5 = scmp.ge.s32.totalorder %s12_s11, 4   ;;  %s462_s10 = smov %s464_s12 }
 0x196   :  { %11 = sbr.rel (!%p9_p5) target bundleno = 2 (0x2), region = 69 }

</bundles_post_ra>
